<compile_context>
chip_gen: v5e
topology: v5e:2x2
jax: 0.10.0
libtpu: 0.0.40
codegen_flags: <defaults>
</compile_context>

<pallas_src>
import numpy as np
import jax
import jax.numpy as jnp
from jax import lax
from jax.experimental import pallas as pl
from jax.experimental.pallas import tpu as pltpu


# ----------------------------- Pallas kernel ------------------------------ #
def critic_kernel(laser_ref, pos_ref, act_ref,
                  m1_ref, m2_ref, w2_ref, slab_ref,
                  out_ref, cat_ref):
    eps = 1e-5
    L2 = m1_ref.shape[1]
    L4 = m2_ref.shape[1]
    H = w2_ref.shape[1]
    P = pos_ref.shape[1]
    A = act_ref.shape[1]

    def layer_norm(x, g, b):
        mu = jnp.mean(x, axis=-1, keepdims=True)
        var = jnp.mean((x - mu) * (x - mu), axis=-1, keepdims=True)
        return (x - mu) * lax.rsqrt(var + eps) * g + b

    # Stage pos/action into the fc2-concat scratch up front; these cheap
    # masked stores overlap with the conv matmuls below.
    cat_ref[:, L4:L4 + P] = pos_ref[...]
    cat_ref[:, L4 + P:L4 + P + A] = act_ref[...]

    # conv1 (dense-matrix form) + LN1_1 + relu.
    # Conv bias omitted: constant across the normalized axis -> cancelled by LN.
    h = jnp.dot(laser_ref[...], m1_ref[...], preferred_element_type=jnp.float32)
    h = layer_norm(h, slab_ref[0:1, 0:L2], slab_ref[1:2, 0:L2])
    h = jnp.maximum(h, 0.0)

    # conv2 + LN1_2 + relu (conv bias dropped for the same reason).
    h = jnp.dot(h, m2_ref[...], preferred_element_type=jnp.float32)
    h = layer_norm(h, slab_ref[2:3, 0:L4], slab_ref[3:4, 0:L4])
    h = jnp.maximum(h, 0.0)

    # Complete the concat([h, pos, action]) and do ONE fused fc2 matmul.
    cat_ref[:, 0:L4] = h
    f = jnp.dot(cat_ref[...], w2_ref[...], preferred_element_type=jnp.float32)
    f = f + slab_ref[4:5, 0:H]                       # fc2 bias
    f = layer_norm(f, slab_ref[5:6, 0:H], slab_ref[6:7, 0:H])
    f = jnp.maximum(f, 0.0)

    # fc3 on the VPU/XLU (a 64x1 MXU matmul would waste a full push/pop).
    w3_row = slab_ref[7:8, 0:H]                      # (1, H)
    b3 = slab_ref[7:8, H:H + 1]                      # (1, 1)
    out_ref[...] = jnp.sum(f * w3_row, axis=-1, keepdims=True) + b3


# ------------------------------ glue / params ----------------------------- #
def conv1d_as_matrix(w_taps, L):
    """Dense (L, L_out) matrix equivalent to Conv1d(1,1,k=5,stride=2,pad=2)."""
    K, stride, pad = 5, 2, 2
    L_out = (L + 2 * pad - K) // stride + 1
    M = np.zeros((L, L_out), dtype=np.float32)
    w = np.asarray(w_taps, dtype=np.float32)
    for j in range(L_out):
        for k in range(K):
            i = stride * j + k - pad
            if 0 <= i < L:
                M[i, j] += w[k]
    return jnp.asarray(M)


def make_params(key, nb_pos, nb_laser, nb_actions, hidden2=64, init_w=0.003):
    L2, L4 = nb_laser // 2, nb_laser // 4
    in_dim = L4 + nb_pos + nb_actions
    assert L2 <= 128 and hidden2 + 1 <= 128, "param slab packing assumes <=128 lanes"
    ks = jax.random.split(key, 8)

    # conv weights: fanin_init with fanin=1 -> U(-1, 1); conv biases PyTorch default.
    w1_taps = jax.random.uniform(ks[0], (5,), minval=-1.0, maxval=1.0)
    w2_taps = jax.random.uniform(ks[1], (5,), minval=-1.0, maxval=1.0)
    bb = 1.0 / np.sqrt(5.0)
    b1 = jax.random.uniform(ks[2], (1, 1), minval=-bb, maxval=bb)
    b2 = jax.random.uniform(ks[3], (1, 1), minval=-bb, maxval=bb)

    # fc2: fanin_init((hidden2, in_dim)) -> U(-1/sqrt(hidden2), 1/sqrt(hidden2))
    v2 = 1.0 / np.sqrt(hidden2)
    wfc2 = jax.random.uniform(ks[4], (hidden2, in_dim), minval=-v2, maxval=v2)
    bfc2 = jax.random.uniform(ks[5], (1, hidden2), minval=-v2, maxval=v2)

    # fc3: U(-init_w, init_w) weights; bias PyTorch default.
    wfc3 = jax.random.uniform(ks[6], (hidden2, 1), minval=-init_w, maxval=init_w)
    bfc3 = jax.random.uniform(ks[7], (1, 1), minval=-v2, maxval=v2)

    g11 = jnp.ones((1, L2), jnp.float32); be11 = jnp.zeros((1, L2), jnp.float32)
    g12 = jnp.ones((1, L4), jnp.float32); be12 = jnp.zeros((1, L4), jnp.float32)
    g2 = jnp.ones((1, hidden2), jnp.float32); be2 = jnp.zeros((1, hidden2), jnp.float32)

    def pad_row(v, width=128):
        v = jnp.asarray(v, jnp.float32).reshape(-1)
        return jnp.pad(v, (0, width - v.shape[0]))

    # One (8,128) f32 slab = exactly one vreg tile worth of "small" parameters.
    slab = jnp.stack([
        pad_row(g11), pad_row(be11),                       # rows 0,1: LN1_1
        pad_row(g12), pad_row(be12),                       # rows 2,3: LN1_2
        pad_row(bfc2), pad_row(g2), pad_row(be2),          # rows 4,5,6: fc2 bias + LN2
        pad_row(jnp.concatenate([wfc3.reshape(-1), bfc3.reshape(-1)])),  # row 7: w3|b3
    ], axis=0)

    params = dict(
        # kernel inputs
        m1=conv1d_as_matrix(w1_taps, nb_laser),
        m2=conv1d_as_matrix(w2_taps, L2),
        w2cat=jnp.transpose(wfc2).astype(jnp.float32),     # (L4+P+A, hidden2)
        slab=slab,
        # reference-only params (full PyTorch math, incl. the LN-cancelled biases)
        b1=b1.astype(jnp.float32), b2=b2.astype(jnp.float32),
        g11=g11, be11=be11, g12=g12, be12=be12,
        bfc2=bfc2.astype(jnp.float32), g2=g2, be2=be2,
        w3=wfc3.astype(jnp.float32), b3=bfc3.astype(jnp.float32),
    )
    return params


def critic_forward(pos, laser, action, params, tile_b=None):
    B = pos.shape[0]
    L = laser.shape[1]
    P = pos.shape[1]
    A = action.shape[1]
    L2, L4 = L // 2, L // 4
    cat_dim = L4 + P + A

    # Batch tile: whole batch for toy sizes; 256 rows (native MXU M-tile on
    # v6e/v7x, 2x the v5e tile, multiple of 8) for large batches.  Weights are
    # tiny, so this sits far below even v7x's 64 MiB VMEM.
    if tile_b is None:
        tile_b = B if B <= 256 else 256
    grid = (pl.cdiv(B, tile_b),)

    def batched(feat):
        return pl.BlockSpec((tile_b, feat), lambda i: (i, 0))

    def resident(arr):
        return pl.BlockSpec(arr.shape, lambda i: (0, 0))

    args = (laser, pos, action,
            params["m1"], params["m2"], params["w2cat"], params["slab"])
    in_specs = [batched(L), batched(P), batched(A),
                resident(params["m1"]), resident(params["m2"]),
                resident(params["w2cat"]), resident(params["slab"])]

    return pl.pallas_call(
        critic_kernel,
        out_shape=jax.ShapeDtypeStruct((B, 1), jnp.float32),
        grid=grid,
        in_specs=in_specs,
        out_specs=batched(1),
        scratch_shapes=[pltpu.VMEM((tile_b, cat_dim), jnp.float32)],
        compiler_params=pltpu.CompilerParams(
            dimension_semantics=("parallel",)),
    )(*args)


# ---------------------------- pure-JAX reference --------------------------- #
def critic_reference(pos, laser, action, params, eps=1e-5):
    """Full PyTorch-equivalent math (conv biases included, LN cancels them)."""
    def ln(x, g, b):
        mu = jnp.mean(x, axis=-1, keepdims=True)
        var = jnp.mean((x - mu) ** 2, axis=-1, keepdims=True)
        return (x - mu) / jnp.sqrt(var + eps) * g + b

    h = laser @ params["m1"] + params["b1"]
    h = jnp.maximum(ln(h, params["g11"], params["be11"]), 0.0)
    h = h @ params["m2"] + params["b2"]
    h = jnp.maximum(ln(h, params["g12"], params["be12"]), 0.0)
    cat = jnp.concatenate([h, pos, action], axis=1)
    f = cat @ params["w2cat"] + params["bfc2"]
    f = jnp.maximum(ln(f, params["g2"], params["be2"]), 0.0)
    return f @ params["w3"] + params["b3"]


# ---------------------------------- main ----------------------------------- #
if __name__ == "__main__":
    B, nb_pos, nb_laser, nb_actions, hidden2 = 2, 4, 32, 2, 64

    key = jax.random.PRNGKey(0)
    kp, kl, ka, kw = jax.random.split(key, 4)
    pos = jax.random.normal(kp, (B, nb_pos), jnp.float32)
    laser = jax.random.normal(kl, (B, nb_laser), jnp.float32)
    action = jax.random.normal(ka, (B, nb_actions), jnp.float32)

    params = make_params(kw, nb_pos, nb_laser, nb_actions, hidden2)

    out = critic_forward(pos, laser, action, params)
    out = jax.block_until_ready(out)

    ref = critic_reference(pos, laser, action, params)
    np.testing.assert_allclose(np.asarray(out), np.asarray(ref),
                               rtol=1e-4, atol=1e-4)
    assert out.shape == (B, 1)
    print("KERNEL_OK")
</pallas_src>

<mosaic_0001>
module attributes {stable_mosaic.version = 11 : i64} {
  func.func @critic_kernel(%arg0: i32, %arg1: memref<2x32xf32, #tpu.memory_space<vmem>>, %arg2: memref<2x4xf32, #tpu.memory_space<vmem>>, %arg3: memref<2x2xf32, #tpu.memory_space<vmem>>, %arg4: memref<32x16xf32, #tpu.memory_space<vmem>>, %arg5: memref<16x8xf32, #tpu.memory_space<vmem>>, %arg6: memref<14x64xf32, #tpu.memory_space<vmem>>, %arg7: memref<8x128xf32, #tpu.memory_space<vmem>>, %arg8: memref<2x1xf32, #tpu.memory_space<vmem>>, %arg9: memref<2x14xf32, #tpu.memory_space<vmem>>) attributes {dimension_semantics = [#tpu.dimension_semantics<parallel>], iteration_bounds = array<i64: 1>, scalar_prefetch = 0 : i64, scratch_operands = 1 : i64, tpu.core_type = #tpu.core_type<tc>, window_params = [{transform_indices = @transform_0, window_bounds = array<i64: 2, 32>}, {transform_indices = @transform_1, window_bounds = array<i64: 2, 4>}, {transform_indices = @transform_2, window_bounds = array<i64: 2, 2>}, {pipeline_mode = #tpu.pipeline_mode<synchronous>, transform_indices = @transform_3, window_bounds = array<i64: 32, 16>}, {pipeline_mode = #tpu.pipeline_mode<synchronous>, transform_indices = @transform_4, window_bounds = array<i64: 16, 8>}, {pipeline_mode = #tpu.pipeline_mode<synchronous>, transform_indices = @transform_5, window_bounds = array<i64: 14, 64>}, {pipeline_mode = #tpu.pipeline_mode<synchronous>, transform_indices = @transform_6, window_bounds = array<i64: 8, 128>}, {transform_indices = @transform_7, window_bounds = array<i64: 2, 1>}]} {
    %c0 = arith.constant 0 : index
    %c0_0 = arith.constant 0 : index
    %0 = vector.load %arg2[%c0, %c0_0] : memref<2x4xf32, #tpu.memory_space<vmem>>, vector<2x4xf32>
    %c0_1 = arith.constant 0 : index
    %c8 = arith.constant 8 : index
    %1 = vector.load %arg9[%c0_1, %c8] : memref<2x14xf32, #tpu.memory_space<vmem>>, vector<2x4xf32>
    tpu.vector_store %arg9[%c0_1, %c8], %0 {strides = array<i32>} : memref<2x14xf32, #tpu.memory_space<vmem>>, vector<2x4xf32>,
    %c0_2 = arith.constant 0 : index
    %c0_3 = arith.constant 0 : index
    %2 = vector.load %arg3[%c0_2, %c0_3] : memref<2x2xf32, #tpu.memory_space<vmem>>, vector<2x2xf32>
    %c0_4 = arith.constant 0 : index
    %c12 = arith.constant 12 : index
    %3 = vector.load %arg9[%c0_4, %c12] : memref<2x14xf32, #tpu.memory_space<vmem>>, vector<2x2xf32>
    tpu.vector_store %arg9[%c0_4, %c12], %2 {strides = array<i32>} : memref<2x14xf32, #tpu.memory_space<vmem>>, vector<2x2xf32>,
    %c0_5 = arith.constant 0 : index
    %c0_6 = arith.constant 0 : index
    %4 = vector.load %arg1[%c0_5, %c0_6] : memref<2x32xf32, #tpu.memory_space<vmem>>, vector<2x32xf32>
    %c0_7 = arith.constant 0 : index
    %c0_8 = arith.constant 0 : index
    %5 = vector.load %arg4[%c0_7, %c0_8] : memref<32x16xf32, #tpu.memory_space<vmem>>, vector<32x16xf32>
    %cst = arith.constant dense<0.000000e+00> : vector<2x16xf32>
    %6 = tpu.matmul %4, %5, %cst {dimension_numbers = #tpu.dot_dimension_numbers<[1], [0], [0], [1], [0, 0, 1, 1], [], []>} : vector<2x32xf32>, vector<32x16xf32>, vector<2x16xf32> -> vector<2x16xf32>
    %c0_9 = arith.constant 0 : index
    %c0_10 = arith.constant 0 : index
    %7 = vector.load %arg7[%c0_9, %c0_10] : memref<8x128xf32, #tpu.memory_space<vmem>>, vector<1x16xf32>
    %c1 = arith.constant 1 : index
    %c0_11 = arith.constant 0 : index
    %8 = vector.load %arg7[%c1, %c0_11] : memref<8x128xf32, #tpu.memory_space<vmem>>, vector<1x16xf32>
    %cst_12 = arith.constant dense<0.000000e+00> : vector<2xf32>
    %9 = vector.multi_reduction <add>, %6, %cst_12 [1] : vector<2x16xf32> to vector<2xf32>
    %10 = vector.shape_cast %9 : vector<2xf32> to vector<2x1xf32>
    %cst_13 = arith.constant 1.600000e+01 : f32
    %11 = vector.broadcast %cst_13 : f32 to vector<2x1xf32>
    %12 = arith.divf %10, %11 : vector<2x1xf32>
    %13 = vector.broadcast %12 : vector<2x1xf32> to vector<2x16xf32>
    %14 = arith.subf %6, %13 : vector<2x16xf32>
    %15 = vector.broadcast %12 : vector<2x1xf32> to vector<2x16xf32>
    %16 = arith.subf %6, %15 : vector<2x16xf32>
    %17 = arith.mulf %14, %16 : vector<2x16xf32>
    %cst_14 = arith.constant dense<0.000000e+00> : vector<2xf32>
    %18 = vector.multi_reduction <add>, %17, %cst_14 [1] : vector<2x16xf32> to vector<2xf32>
    %19 = vector.shape_cast %18 : vector<2xf32> to vector<2x1xf32>
    %cst_15 = arith.constant 1.600000e+01 : f32
    %20 = vector.broadcast %cst_15 : f32 to vector<2x1xf32>
    %21 = arith.divf %19, %20 : vector<2x1xf32>
    %22 = vector.broadcast %12 : vector<2x1xf32> to vector<2x16xf32>
    %23 = arith.subf %6, %22 : vector<2x16xf32>
    %cst_16 = arith.constant 9.99999974E-6 : f32
    %24 = vector.broadcast %cst_16 : f32 to vector<2x1xf32>
    %25 = arith.addf %21, %24 : vector<2x1xf32>
    %26 = math.rsqrt %25 : vector<2x1xf32>
    %27 = vector.broadcast %26 : vector<2x1xf32> to vector<2x16xf32>
    %28 = arith.mulf %23, %27 : vector<2x16xf32>
    %29 = vector.broadcast %7 : vector<1x16xf32> to vector<2x16xf32>
    %30 = arith.mulf %28, %29 : vector<2x16xf32>
    %31 = vector.broadcast %8 : vector<1x16xf32> to vector<2x16xf32>
    %32 = arith.addf %30, %31 : vector<2x16xf32>
    %cst_17 = arith.constant 0.000000e+00 : f32
    %33 = vector.broadcast %cst_17 : f32 to vector<2x16xf32>
    %34 = arith.maximumf %32, %33 : vector<2x16xf32>
    %c0_18 = arith.constant 0 : index
    %c0_19 = arith.constant 0 : index
    %35 = vector.load %arg5[%c0_18, %c0_19] : memref<16x8xf32, #tpu.memory_space<vmem>>, vector<16x8xf32>
    %cst_20 = arith.constant dense<0.000000e+00> : vector<2x8xf32>
    %36 = tpu.matmul %34, %35, %cst_20 {dimension_numbers = #tpu.dot_dimension_numbers<[1], [0], [0], [1], [0, 0, 1, 1], [], []>} : vector<2x16xf32>, vector<16x8xf32>, vector<2x8xf32> -> vector<2x8xf32>
    %c2 = arith.constant 2 : index
    %c0_21 = arith.constant 0 : index
    %37 = vector.load %arg7[%c2, %c0_21] : memref<8x128xf32, #tpu.memory_space<vmem>>, vector<1x8xf32>
    %c3 = arith.constant 3 : index
    %c0_22 = arith.constant 0 : index
    %38 = vector.load %arg7[%c3, %c0_22] : memref<8x128xf32, #tpu.memory_space<vmem>>, vector<1x8xf32>
    %cst_23 = arith.constant dense<0.000000e+00> : vector<2xf32>
    %39 = vector.multi_reduction <add>, %36, %cst_23 [1] : vector<2x8xf32> to vector<2xf32>
    %40 = vector.shape_cast %39 : vector<2xf32> to vector<2x1xf32>
    %cst_24 = arith.constant 8.000000e+00 : f32
    %41 = vector.broadcast %cst_24 : f32 to vector<2x1xf32>
    %42 = arith.divf %40, %41 : vector<2x1xf32>
    %43 = vector.broadcast %42 : vector<2x1xf32> to vector<2x8xf32>
    %44 = arith.subf %36, %43 : vector<2x8xf32>
    %45 = vector.broadcast %42 : vector<2x1xf32> to vector<2x8xf32>
    %46 = arith.subf %36, %45 : vector<2x8xf32>
    %47 = arith.mulf %44, %46 : vector<2x8xf32>
    %cst_25 = arith.constant dense<0.000000e+00> : vector<2xf32>
    %48 = vector.multi_reduction <add>, %47, %cst_25 [1] : vector<2x8xf32> to vector<2xf32>
    %49 = vector.shape_cast %48 : vector<2xf32> to vector<2x1xf32>
    %cst_26 = arith.constant 8.000000e+00 : f32
    %50 = vector.broadcast %cst_26 : f32 to vector<2x1xf32>
    %51 = arith.divf %49, %50 : vector<2x1xf32>
    %52 = vector.broadcast %42 : vector<2x1xf32> to vector<2x8xf32>
    %53 = arith.subf %36, %52 : vector<2x8xf32>
    %cst_27 = arith.constant 9.99999974E-6 : f32
    %54 = vector.broadcast %cst_27 : f32 to vector<2x1xf32>
    %55 = arith.addf %51, %54 : vector<2x1xf32>
    %56 = math.rsqrt %55 : vector<2x1xf32>
    %57 = vector.broadcast %56 : vector<2x1xf32> to vector<2x8xf32>
    %58 = arith.mulf %53, %57 : vector<2x8xf32>
    %59 = vector.broadcast %37 : vector<1x8xf32> to vector<2x8xf32>
    %60 = arith.mulf %58, %59 : vector<2x8xf32>
    %61 = vector.broadcast %38 : vector<1x8xf32> to vector<2x8xf32>
    %62 = arith.addf %60, %61 : vector<2x8xf32>
    %cst_28 = arith.constant 0.000000e+00 : f32
    %63 = vector.broadcast %cst_28 : f32 to vector<2x8xf32>
    %64 = arith.maximumf %62, %63 : vector<2x8xf32>
    %c0_29 = arith.constant 0 : index
    %c0_30 = arith.constant 0 : index
    %65 = vector.load %arg9[%c0_29, %c0_30] : memref<2x14xf32, #tpu.memory_space<vmem>>, vector<2x8xf32>
    tpu.vector_store %arg9[%c0_29, %c0_30], %64 {strides = array<i32>} : memref<2x14xf32, #tpu.memory_space<vmem>>, vector<2x8xf32>,
    %c0_31 = arith.constant 0 : index
    %c0_32 = arith.constant 0 : index
    %66 = vector.load %arg9[%c0_31, %c0_32] : memref<2x14xf32, #tpu.memory_space<vmem>>, vector<2x14xf32>
    %c0_33 = arith.constant 0 : index
    %c0_34 = arith.constant 0 : index
    %67 = vector.load %arg6[%c0_33, %c0_34] : memref<14x64xf32, #tpu.memory_space<vmem>>, vector<14x64xf32>
    %cst_35 = arith.constant dense<0.000000e+00> : vector<2x64xf32>
    %68 = tpu.matmul %66, %67, %cst_35 {dimension_numbers = #tpu.dot_dimension_numbers<[1], [0], [0], [1], [0, 0, 1, 1], [], []>} : vector<2x14xf32>, vector<14x64xf32>, vector<2x64xf32> -> vector<2x64xf32>
    %c4 = arith.constant 4 : index
    %c0_36 = arith.constant 0 : index
    %69 = vector.load %arg7[%c4, %c0_36] : memref<8x128xf32, #tpu.memory_space<vmem>>, vector<1x64xf32>
    %70 = vector.broadcast %69 : vector<1x64xf32> to vector<2x64xf32>
    %71 = arith.addf %68, %70 : vector<2x64xf32>
    %c5 = arith.constant 5 : index
    %c0_37 = arith.constant 0 : index
    %72 = vector.load %arg7[%c5, %c0_37] : memref<8x128xf32, #tpu.memory_space<vmem>>, vector<1x64xf32>
    %c6 = arith.constant 6 : index
    %c0_38 = arith.constant 0 : index
    %73 = vector.load %arg7[%c6, %c0_38] : memref<8x128xf32, #tpu.memory_space<vmem>>, vector<1x64xf32>
    %cst_39 = arith.constant dense<0.000000e+00> : vector<2xf32>
    %74 = vector.multi_reduction <add>, %71, %cst_39 [1] : vector<2x64xf32> to vector<2xf32>
    %75 = vector.shape_cast %74 : vector<2xf32> to vector<2x1xf32>
    %cst_40 = arith.constant 6.400000e+01 : f32
    %76 = vector.broadcast %cst_40 : f32 to vector<2x1xf32>
    %77 = arith.divf %75, %76 : vector<2x1xf32>
    %78 = vector.broadcast %77 : vector<2x1xf32> to vector<2x64xf32>
    %79 = arith.subf %71, %78 : vector<2x64xf32>
    %80 = vector.broadcast %77 : vector<2x1xf32> to vector<2x64xf32>
    %81 = arith.subf %71, %80 : vector<2x64xf32>
    %82 = arith.mulf %79, %81 : vector<2x64xf32>
    %cst_41 = arith.constant dense<0.000000e+00> : vector<2xf32>
    %83 = vector.multi_reduction <add>, %82, %cst_41 [1] : vector<2x64xf32> to vector<2xf32>
    %84 = vector.shape_cast %83 : vector<2xf32> to vector<2x1xf32>
    %cst_42 = arith.constant 6.400000e+01 : f32
    %85 = vector.broadcast %cst_42 : f32 to vector<2x1xf32>
    %86 = arith.divf %84, %85 : vector<2x1xf32>
    %87 = vector.broadcast %77 : vector<2x1xf32> to vector<2x64xf32>
    %88 = arith.subf %71, %87 : vector<2x64xf32>
    %cst_43 = arith.constant 9.99999974E-6 : f32
    %89 = vector.broadcast %cst_43 : f32 to vector<2x1xf32>
    %90 = arith.addf %86, %89 : vector<2x1xf32>
    %91 = math.rsqrt %90 : vector<2x1xf32>
    %92 = vector.broadcast %91 : vector<2x1xf32> to vector<2x64xf32>
    %93 = arith.mulf %88, %92 : vector<2x64xf32>
    %94 = vector.broadcast %72 : vector<1x64xf32> to vector<2x64xf32>
    %95 = arith.mulf %93, %94 : vector<2x64xf32>
    %96 = vector.broadcast %73 : vector<1x64xf32> to vector<2x64xf32>
    %97 = arith.addf %95, %96 : vector<2x64xf32>
    %cst_44 = arith.constant 0.000000e+00 : f32
    %98 = vector.broadcast %cst_44 : f32 to vector<2x64xf32>
    %99 = arith.maximumf %97, %98 : vector<2x64xf32>
    %c7 = arith.constant 7 : index
    %c0_45 = arith.constant 0 : index
    %100 = vector.load %arg7[%c7, %c0_45] : memref<8x128xf32, #tpu.memory_space<vmem>>, vector<1x64xf32>
    %c7_46 = arith.constant 7 : index
    %c64 = arith.constant 64 : index
    %101 = vector.load %arg7[%c7_46, %c64] : memref<8x128xf32, #tpu.memory_space<vmem>>, vector<1x1xf32>
    %102 = vector.broadcast %100 : vector<1x64xf32> to vector<2x64xf32>
    %103 = arith.mulf %99, %102 : vector<2x64xf32>
    %cst_47 = arith.constant dense<0.000000e+00> : vector<2xf32>
    %104 = vector.multi_reduction <add>, %103, %cst_47 [1] : vector<2x64xf32> to vector<2xf32>
    %105 = vector.shape_cast %104 : vector<2xf32> to vector<2x1xf32>
    %106 = vector.broadcast %101 : vector<1x1xf32> to vector<2x1xf32>
    %107 = arith.addf %105, %106 : vector<2x1xf32>
    %c0_48 = arith.constant 0 : index
    %c0_49 = arith.constant 0 : index
    %108 = vector.load %arg8[%c0_48, %c0_49] : memref<2x1xf32, #tpu.memory_space<vmem>>, vector<2x1xf32>
    tpu.vector_store %arg8[%c0_48, %c0_49], %107 {strides = array<i32>} : memref<2x1xf32, #tpu.memory_space<vmem>>, vector<2x1xf32>,
    return
  }
  func.func @transform_0(%arg0: i32) -> (i32, i32) {
    %c0_i32 = arith.constant 0 : i32
    %c0_i32_0 = arith.constant 0 : i32
    return %arg0, %c0_i32 : i32, i32
  }
  func.func @transform_1(%arg0: i32) -> (i32, i32) {
    %c0_i32 = arith.constant 0 : i32
    %c0_i32_0 = arith.constant 0 : i32
    return %arg0, %c0_i32 : i32, i32
  }
  func.func @transform_2(%arg0: i32) -> (i32, i32) {
    %c0_i32 = arith.constant 0 : i32
    %c0_i32_0 = arith.constant 0 : i32
    return %arg0, %c0_i32 : i32, i32
  }
  func.func @transform_3(%arg0: i32) -> (i32, i32) {
    %c0_i32 = arith.constant 0 : i32
    %c0_i32_0 = arith.constant 0 : i32
    %c0_i32_1 = arith.constant 0 : i32
    return %c0_i32, %c0_i32_0 : i32, i32
  }
  func.func @transform_4(%arg0: i32) -> (i32, i32) {
    %c0_i32 = arith.constant 0 : i32
    %c0_i32_0 = arith.constant 0 : i32
    %c0_i32_1 = arith.constant 0 : i32
    return %c0_i32, %c0_i32_0 : i32, i32
  }
  func.func @transform_5(%arg0: i32) -> (i32, i32) {
    %c0_i32 = arith.constant 0 : i32
    %c0_i32_0 = arith.constant 0 : i32
    %c0_i32_1 = arith.constant 0 : i32
    return %c0_i32, %c0_i32_0 : i32, i32
  }
  func.func @transform_6(%arg0: i32) -> (i32, i32) {
    %c0_i32 = arith.constant 0 : i32
    %c0_i32_0 = arith.constant 0 : i32
    %c0_i32_1 = arith.constant 0 : i32
    return %c0_i32, %c0_i32_0 : i32, i32
  }
  func.func @transform_7(%arg0: i32) -> (i32, i32) {
    %c0_i32 = arith.constant 0 : i32
    %c0_i32_0 = arith.constant 0 : i32
    return %arg0, %c0_i32 : i32, i32
  }
}

</mosaic_0001>

<bundles_post_ra>
// kernel: tpu_custom_call.1
= control target key start
LH: loop header
LB: loop body
LE: loop exit
PB: predicated region body
PF: predicated region fallthrough
CT: control target
= control target key end

     0   :  { %vm45_vm0 = vcmask 261120   ;;  %vm71_vm1 = vcmask 123904   ;;  %v287_v7 = vmov 16.0   ;;  %vm108_vm6 = vcmask 130048   ;;  %s289_s18 = smov 8   ;;  %s290_s21 = smov 12   ;;  %s401_s3 = inlined_call_operand.vmem [shape: f32[32,16], index: 3, kind: input, shape index: {}]   ;;  %s402_s0 = inlined_call_operand.vmem [shape: f32[2,32], index: 0, kind: input, shape index: {}]   ;;  %s403_s6 = inlined_call_operand.vmem [shape: f32[8,128], index: 6, kind: input, shape index: {}]   ;;  %s404_s4 = inlined_call_operand.vmem [shape: f32[16,8], index: 4, kind: input, shape index: {}]   ;;  %s405_s1 = inlined_call_operand.vmem [shape: f32[2,4], index: 1, kind: input, shape index: {}]   ;;  %s406_s2 = inlined_call_operand.vmem [shape: f32[2,2], index: 2, kind: input, shape index: {}]   ;;  %s407_s5 = inlined_call_operand.vmem [shape: f32[14,64], index: 5, kind: input, shape index: {}]   ;;  %s408_s7 = inlined_call_operand.vmem [shape: f32[2,1], index: 7, kind: output, shape index: {}]  }
   0x1   :  { %v44_v0 = vld [vmem:[%s401_s3 + $0x18] sm:$0xff]  ;;  %v43_v1 = vld [vmem:[%s401_s3 + $0x10] sm:$0xff]  ;;  %v42_v2 = vld [vmem:[%s401_s3 + $0x8] sm:$0xff]  ;;  %275 = vrcp.f32 %v287_v7  ;;  %vm134_vm7 = vcmask 58368   ;;  %v288_v39 = vmov 8.0   ;;  %vm31_vm9 = vcmask 91200  }
   0x2   :  { %61 = vmatpush.msra.mxu0 %v44_v0  ;;  %v41_v3 = vld [vmem:[%s401_s3] sm:$0xff]  ;;  %v107_v19 = vld [vmem:[%s404_s4 + $0x8] sm:$0xff]  ;;  %vm38_vm10 = vcmask 107616   ;;  %vm179_vm11 = vcmask 1045504   ;;  %vm175_vm15 = vcmask 113664   ;;  %s292_s3 = smov 64  }
   0x3   :  { %v40_v4 = vld [vmem:[%s402_s0] sm:$0x3]  ;;  %126 = vmatpush.msra.mxu1 %v107_v19  ;;  %v172_v55 = vld [vmem:[%s407_s5 + $0x8] sm:$0x3f] }
   0x4   :  { %62 = vmatpush.msra.mxu0 %v43_v1  ;;  %v106_v20 = vld [vmem:[%s404_s4] sm:$0xff]  ;;  %259 = vmatpush.msk.msra.mxu2 %vm179_vm11, %v172_v55 }
   0x5   :  { %127 = vmatpush.msra.mxu1 %v106_v20  ;;  %v267_v30 = vld [vmem:[%s403_s6] ss:$0 sm:$0xff]  ;;  %v268_v33 = vld [vmem:[%s403_s6 + $0x1] ss:$0 sm:$0xff] }
   0x6   :  { %63 = vmatpush.msra.mxu0 %v42_v2  ;;  %v26_v40 = vld [vmem:[%s405_s1] sm:$0x3]  ;;  %v269_v2 = vld [vmem:[%s403_s6 + $0x2] ss:$0 sm:$0xff] }
   0x7   :  { %v276_v8 = vpop.eup %275  ;;  %28 = vrot.lane.b32.xlu2 %v26_v40, %s289_s18  ;;  %v33_v43 = vld [vmem:[%s406_s2] sm:$0x3] }
   0x8   :  { %64 = vmatpush.msra.mxu0 %v41_v3  ;;  %v76_v9 = vmul.f32 16.0, %v276_v8  ;;  %vm80_vm2 = vweird.f32 %v276_v8  ;;  %v171_v56 = vld [vmem:[%s407_s5] sm:$0xff] }
   0x9   :  { %257 = vmatmul.msk.f32.vlgmr.msra.gmra.mxu0 %vm45_vm0, %v40_v4  ;;  %198 = vmatpush.msra.mxu2 %v171_v56  ;;  %vm205_vm0 = vcmask 517120  }
   0xa   :  { %v77_v10 = vsub.f32 1.0, %v76_v9 }
   0xc   :  { %v78_v11 = vmul.f32 %v276_v8, %v77_v10  ;;  %v271_v10 = vld [vmem:[%s403_s6 + $0x4] ss:$0 sm:$0xff] }
   0xe   :  { %v79_v12 = vadd.f32 %v276_v8, %v78_v11 }
   0xf   :  { %35 = vrot.lane.b32.xlu2 %v33_v43, %s290_s21 }
  0x10   :  { %v81_v13 = vsel %vm80_vm2, %v276_v8, %v79_v12 }
  0x61   :  { %v29_v53 = vpop.permute.xlu2 %28 }
  0x62   :  { %32 = vst.msk [vmem:[#allocation2] sm:$0x3] %vm31_vm9, %v29_v53 }
  0x69   :  { %v36_v54 = vpop.permute.xlu2 %35 }
  0x6a   :  { %39 = vst.msk [vmem:[#allocation2] sm:$0x3] %vm38_vm10, %v36_v54 }
  0x86   :  { %v66_v5 = vpop.f32.mrf.mxu0 }
  0x87   :  { %v72_v6 = vsel %vm71_vm1, %v66_v5, 0.0 }
  0x88   :  { %73 = vadd.xlane.f32.xlu0 %v72_v6 }
  0xfb   :  { %v74_v14 = vpop.xlane.xlu0 %73 }
  0xfc   :  { %v82_v15 = vmul.f32 %v81_v13, %v74_v14  ;;  %v291_v14 = vmov 64.0  }
  0xfe   :  { %v83_v16 = vsub.f32 %v66_v5, %v82_v15  ;;  %v270_v5 = vld [vmem:[%s403_s6 + $0x3] ss:$0 sm:$0xff] }
 0x100   :  { %v84_v17 = vmul.f32 %v83_v16, %v83_v16 }
 0x102   :  { %v85_v18 = vsel %vm71_vm1, %v84_v17, 0.0 }
 0x103   :  { %86 = vadd.xlane.f32.xlu0 %v85_v18 }
 0x176   :  { %v87_v21 = vpop.xlane.xlu0 %86 }
 0x177   :  { %v88_v22 = vmul.f32 %v87_v21, %v81_v13 }
 0x179   :  { %v89_v23 = vadd.f32 1e-05, %v88_v22 }
 0x17b   :  { %277 = vrsqrt.f32 %v89_v23  ;;  %vm96_vm4 = vweird.f32 %v89_v23 }
 0x17c   :  { %279 = vrcp.f32 %v288_v39 }
 0x181   :  { %v278_v24 = vpop.eup %277 }
 0x182   :  { %v91_v25 = vmul.f32 %v278_v24, %v89_v23  ;;  %vm97_vm3 = vweird.f32 %v278_v24  ;;  %v280_v41 = vpop.eup %279 }
 0x183   :  { %vm98_vm5 = vmor %vm96_vm4, %vm97_vm3  ;;  %v139_v42 = vmul.f32 8.0, %v280_v41  ;;  %vm143_vm8 = vweird.f32 %v280_v41 }
 0x184   :  { %v92_v26 = vmul.f32 %v278_v24, %v91_v25 }
 0x185   :  { %v140_v44 = vsub.f32 1.0, %v139_v42 }
 0x186   :  { %v93_v27 = vmul.f32 0.5, %v92_v26 }
 0x187   :  { %v141_v45 = vmul.f32 %v280_v41, %v140_v44 }
 0x188   :  { %v94_v28 = vsub.f32 1.5, %v93_v27 }
 0x189   :  { %v142_v46 = vadd.f32 %v280_v41, %v141_v45 }
 0x18a   :  { %v95_v29 = vmul.f32 %v278_v24, %v94_v28 }
 0x18b   :  { %v144_v47 = vsel %vm143_vm8, %v280_v41, %v142_v46  ;;  %v274_v41 = vld [vmem:[%s403_s6 + $0x7] ss:$0 sm:$0xff] }
 0x18c   :  { %v99_v31 = vsel %vm98_vm5, %v278_v24, %v95_v29  ;;  %vm251_vm5 = vcmask 1024  }
 0x18d   :  { %v100_v32 = vmul.f32 %v99_v31, %v83_v16 }
 0x18f   :  { %v102_v34 = vmul.f32 %v267_v30, %v100_v32 }
 0x191   :  { %v104_v35 = vadd.f32 %v268_v33, %v102_v34 }
 0x193   :  { %v105_v36 = vmax.f32 %v104_v35, 0.0  ;;  %v272_v35 = vld [vmem:[%s403_s6 + $0x5] ss:$0 sm:$0xff] }
 0x195   :  { %258 = vmatmul.msk.f32.vlgmr.msra.gmra.mxu1 %vm108_vm6, %v105_v36 }
 0x212   :  { %v129_v37 = vpop.f32.mrf.mxu1 }
 0x213   :  { %v135_v38 = vsel %vm134_vm7, %v129_v37, 0.0 }
 0x214   :  { %136 = vadd.xlane.f32.xlu1 %v135_v38  ;;  %v273_v38 = vld [vmem:[%s403_s6 + $0x6] ss:$0 sm:$0xff] }
 0x287   :  { %v137_v48 = vpop.xlane.xlu1 %136 }
 0x288   :  { %v145_v49 = vmul.f32 %v144_v47, %v137_v48 }
 0x28a   :  { %v146_v50 = vsub.f32 %v129_v37, %v145_v49 }
 0x28c   :  { %v147_v51 = vmul.f32 %v146_v50, %v146_v50 }
 0x28e   :  { %v148_v52 = vsel %vm134_vm7, %v147_v51, 0.0 }
 0x28f   :  { %149 = vadd.xlane.f32.xlu1 %v148_v52 }
 0x302   :  { %v150_v57 = vpop.xlane.xlu1 %149 }
 0x303   :  { %v151_v58 = vmul.f32 %v150_v57, %v144_v47 }
 0x305   :  { %v152_v59 = vadd.f32 1e-05, %v151_v58 }
 0x307   :  { %281 = vrsqrt.f32 %v152_v59  ;;  %vm159_vm13 = vweird.f32 %v152_v59 }
 0x308   :  { %283 = vrcp.f32 %v291_v14 }
 0x30d   :  { %v282_v60 = vpop.eup %281 }
 0x30e   :  { %v154_v61 = vmul.f32 %v282_v60, %v152_v59  ;;  %vm160_vm12 = vweird.f32 %v282_v60  ;;  %v284_v15 = vpop.eup %283 }
 0x30f   :  { %vm161_vm14 = vmor %vm159_vm13, %vm160_vm12  ;;  %v210_v16 = vmul.f32 64.0, %v284_v15  ;;  %vm214_vm1 = vweird.f32 %v284_v15 }
 0x310   :  { %v155_v62 = vmul.f32 %v282_v60, %v154_v61 }
 0x311   :  { %v211_v17 = vsub.f32 1.0, %v210_v16 }
 0x312   :  { %v156_v63 = vmul.f32 0.5, %v155_v62 }
 0x313   :  { %v212_v18 = vmul.f32 %v284_v15, %v211_v17 }
 0x314   :  { %v157_v0 = vsub.f32 1.5, %v156_v63 }
 0x315   :  { %v213_v19 = vadd.f32 %v284_v15, %v212_v18 }
 0x316   :  { %v158_v1 = vmul.f32 %v282_v60, %v157_v0 }
 0x317   :  { %v215_v20 = vsel %vm214_vm1, %v284_v15, %v213_v19 }
 0x318   :  { %v162_v3 = vsel %vm161_vm14, %v282_v60, %v158_v1 }
 0x319   :  { %v163_v4 = vmul.f32 %v162_v3, %v146_v50 }
 0x31b   :  { %v165_v6 = vmul.f32 %v269_v2, %v163_v4 }
 0x31d   :  { %v167_v7 = vadd.f32 %v270_v5, %v165_v6 }
 0x31f   :  { %v168_v8 = vmax.f32 %v167_v7, 0.0 }
 0x321   :  { %169 = vst.msk [vmem:[#allocation2] sm:$0x3] %vm134_vm7, %v168_v8 }
 0x328   :  { %v170_v9 = vld [vmem:[#allocation2] sm:$0x3] }
 0x329   :  { %260 = vmatmul.msk.f32.vlgmr.msra.gmra.mxu2 %vm175_vm15, %v170_v9 }
 0x3ac   :  { %v200_v11 = vpop.f32.mrf.mxu2 }
 0x3ad   :  { %v201_v12 = vadd.f32 %v271_v10, %v200_v11 }
 0x3af   :  { %v206_v13 = vsel %vm205_vm0, %v201_v12, 0.0 }
 0x3b0   :  { %207 = vadd.xlane.f32.xlu0 %v206_v13 }
 0x423   :  { %v208_v21 = vpop.xlane.xlu0 %207 }
 0x424   :  { %v216_v22 = vmul.f32 %v215_v20, %v208_v21 }
 0x426   :  { %v217_v23 = vsub.f32 %v201_v12, %v216_v22 }
 0x428   :  { %v218_v24 = vmul.f32 %v217_v23, %v217_v23 }
 0x42a   :  { %v219_v25 = vsel %vm205_vm0, %v218_v24, 0.0 }
 0x42b   :  { %220 = vadd.xlane.f32.xlu1 %v219_v25 }
 0x49e   :  { %v221_v26 = vpop.xlane.xlu1 %220 }
 0x49f   :  { %v222_v27 = vmul.f32 %v221_v26, %v215_v20 }
 0x4a1   :  { %v223_v28 = vadd.f32 1e-05, %v222_v27 }
 0x4a3   :  { %285 = vrsqrt.f32 %v223_v28  ;;  %vm230_vm3 = vweird.f32 %v223_v28 }
 0x4a9   :  { %v286_v29 = vpop.eup %285 }
 0x4aa   :  { %v225_v30 = vmul.f32 %v286_v29, %v223_v28  ;;  %vm231_vm2 = vweird.f32 %v286_v29 }
 0x4ab   :  { %vm232_vm4 = vmor %vm230_vm3, %vm231_vm2 }
 0x4ac   :  { %v226_v31 = vmul.f32 %v286_v29, %v225_v30 }
 0x4ae   :  { %v227_v32 = vmul.f32 0.5, %v226_v31 }
 0x4b0   :  { %v228_v33 = vsub.f32 1.5, %v227_v32 }
 0x4b2   :  { %v229_v34 = vmul.f32 %v286_v29, %v228_v33 }
 0x4b4   :  { %v233_v36 = vsel %vm232_vm4, %v286_v29, %v229_v34 }
 0x4b5   :  { %v234_v37 = vmul.f32 %v233_v36, %v217_v23 }
 0x4b7   :  { %v236_v39 = vmul.f32 %v272_v35, %v234_v37 }
 0x4b9   :  { %v238_v40 = vadd.f32 %v273_v38, %v236_v39 }
 0x4bb   :  { %v239_v42 = vmax.f32 %v238_v40, 0.0 }
 0x4bd   :  { %v242_v43 = vmul.f32 %v274_v41, %v239_v42 }
 0x4bf   :  { %v243_v44 = vsel %vm205_vm0, %v242_v43, 0.0 }
 0x4c0   :  { %244 = vadd.xlane.f32.xlu2 %v243_v44 }
 0x533   :  { %v245_v45 = vpop.xlane.xlu2 %244 }
 0x534   :  { %v246_v46 = vadd.f32 %v274_v41, %v245_v45 }
 0x536   :  { %248 = vrot.lane.b32.xlu0 %v246_v46, %s292_s3 }
 0x5a8   :  { %v249_v47 = vpop.permute.xlu0 %248 }
 0x5a9   :  { %252 = vst.msk [vmem:[%s408_s7] sm:$0x3] %vm251_vm5, %v249_v47 }

</bundles_post_ra>
